<compile_context>
chip_gen: v6e
topology: v6e:2x2x1
jax: 0.10.0
libtpu: 0.0.40
codegen_flags: <defaults>
</compile_context>

<pallas_src>
import functools

import jax
import jax.numpy as jnp
from jax.experimental import pallas as pl
from jax.experimental.pallas import tpu as pltpu


def _round_up(x, m):
    return (x + m - 1) // m * m


def _choose_tile_b(b_pad, c_pad, h_pad, budget_bytes=24 * 1024 * 1024):
    """Largest batch tile (multiple of 8) whose activations fit the VMEM budget."""
    for tb in (1024, 512, 256, 128, 64, 32, 16, 8):
        if tb > b_pad:
            continue
        # double-buffered f32 x tile + double-buffered f32 out tile + f32 intermediate h
        act = tb * (2 * c_pad * 4 + 2 * c_pad * 4 + h_pad * 4)
        # bf16 weights (assume double-buffered by the pipeline even if resident)
        wts = 2 * (c_pad * h_pad + h_pad * c_pad) * 2
        if act + wts <= budget_bytes:
            return tb
    return 8


def _stats_kernel(x_ref, w1_ref, gamma_ref, beta_ref,     # inputs
                  scale_ref, shift_ref,                    # outputs
                  sum_ref, sq_ref,                         # VMEM scratch
                  *, batch_size, eps):
    i = pl.program_id(0)

    @pl.when(i == 0)
    def _():
        sum_ref[...] = jnp.zeros_like(sum_ref)
        sq_ref[...] = jnp.zeros_like(sq_ref)

    # linear1 on the MXU: bf16 operands, f32 accumulation.
    h = jnp.dot(x_ref[...].astype(jnp.bfloat16), w1_ref[...],
                preferred_element_type=jnp.float32)        # (TB, H)

    # single-pass stats: sum and sum-of-squares (padded batch rows are zero -> no effect)
    sum_ref[...] += jnp.sum(h, axis=0, keepdims=True)
    sq_ref[...] += jnp.sum(h * h, axis=0, keepdims=True)

    @pl.when(i == pl.num_programs(0) - 1)
    def _():
        inv_b = 1.0 / batch_size
        mean = sum_ref[...] * inv_b
        var = sq_ref[...] * inv_b - mean * mean            # biased (training-mode) variance
        scale = gamma_ref[...] * jax.lax.rsqrt(var + eps)  # folded BN affine
        scale_ref[...] = scale
        shift_ref[...] = beta_ref[...] - mean * scale


def _apply_kernel(x_ref, w1_ref, w2_ref, scale_ref, shift_ref, o_ref):
    # linear1 (bf16 operands, f32 acc)
    h = jnp.dot(x_ref[...].astype(jnp.bfloat16), w1_ref[...],
                preferred_element_type=jnp.float32)        # (TB, H)
    # folded BatchNorm: one fused scale/shift, then ReLU (f32 on the VPU)
    h = jnp.maximum(h * scale_ref[...] + shift_ref[...], 0.0)
    # linear2 (bf16 operands, f32 acc)
    out = jnp.dot(h.astype(jnp.bfloat16), w2_ref[...],
                  preferred_element_type=jnp.float32)      # (TB, C)
    o_ref[...] = (1.0 + jnp.tanh(out)).astype(o_ref.dtype)


def sandglass_block(x, w1, w2, gamma, beta, *, eps=1e-5):
    """x: (B, in_c) f32; w1: (in_c, hidden); w2: (hidden, in_c); gamma/beta: (hidden,) or (1, hidden)."""
    B, in_c = x.shape
    hidden = w1.shape[1]
    assert w1.shape == (in_c, hidden) and w2.shape == (hidden, in_c)

    # Lane-dense padding of the feature dims; zero padding is exact for the real features
    # (zero weight rows/cols contribute nothing; padded BN channels get gamma=beta=0 -> 0).
    c_pad = _round_up(max(in_c, 128), 128)
    h_pad = _round_up(max(hidden, 128), 128)
    b8 = _round_up(max(B, 8), 8)
    tb = _choose_tile_b(b8, c_pad, h_pad)
    b_pad = _round_up(b8, tb)
    nb = b_pad // tb

    x_p = jnp.zeros((b_pad, c_pad), jnp.float32).at[:B, :in_c].set(x.astype(jnp.float32))
    w1_p = jnp.zeros((c_pad, h_pad), jnp.bfloat16).at[:in_c, :hidden].set(w1.astype(jnp.bfloat16))
    w2_p = jnp.zeros((h_pad, c_pad), jnp.bfloat16).at[:hidden, :in_c].set(w2.astype(jnp.bfloat16))
    gamma_p = jnp.zeros((1, h_pad), jnp.float32).at[0, :hidden].set(
        jnp.reshape(gamma, (-1,)).astype(jnp.float32))
    beta_p = jnp.zeros((1, h_pad), jnp.float32).at[0, :hidden].set(
        jnp.reshape(beta, (-1,)).astype(jnp.float32))

    vec_spec = lambda: pl.BlockSpec((1, h_pad), lambda i: (0, 0))      # resident small vectors
    x_spec = pl.BlockSpec((tb, c_pad), lambda i: (i, 0))               # streamed batch tiles
    w1_spec = pl.BlockSpec((c_pad, h_pad), lambda i: (0, 0))           # resident weights
    w2_spec = pl.BlockSpec((h_pad, c_pad), lambda i: (0, 0))

    vmem_limit = 48 * 1024 * 1024  # comfortably under v7x's 64 MiB physical VMEM

    # ---- pass 1: full-batch BN statistics, folded into (scale, shift) ----
    scale, shift = pl.pallas_call(
        functools.partial(_stats_kernel, batch_size=float(B), eps=float(eps)),
        out_shape=(jax.ShapeDtypeStruct((1, h_pad), jnp.float32),
                   jax.ShapeDtypeStruct((1, h_pad), jnp.float32)),
        grid_spec=pltpu.PrefetchScalarGridSpec(
            num_scalar_prefetch=0,
            grid=(nb,),
            in_specs=[x_spec, w1_spec, vec_spec(), vec_spec()],
            out_specs=[vec_spec(), vec_spec()],
            scratch_shapes=[pltpu.VMEM((1, h_pad), jnp.float32),
                            pltpu.VMEM((1, h_pad), jnp.float32)]),
        compiler_params=pltpu.CompilerParams(
            dimension_semantics=("arbitrary",),          # cross-tile accumulation
            vmem_limit_bytes=vmem_limit),
    )(x_p, w1_p, gamma_p, beta_p)

    # ---- pass 2: normalize + ReLU + linear2 + tanh + 1 (batch tiles independent) ----
    out_p = pl.pallas_call(
        _apply_kernel,
        out_shape=jax.ShapeDtypeStruct((b_pad, c_pad), jnp.float32),
        grid_spec=pltpu.PrefetchScalarGridSpec(
            num_scalar_prefetch=0,
            grid=(nb,),
            in_specs=[x_spec, w1_spec, w2_spec, vec_spec(), vec_spec()],
            out_specs=pl.BlockSpec((tb, c_pad), lambda i: (i, 0))),
        compiler_params=pltpu.CompilerParams(
            dimension_semantics=("parallel",),           # megacore / 2-TC sharding on v7x
            vmem_limit_bytes=vmem_limit),
    )(x_p, w1_p, w2_p, scale, shift)

    return out_p[:B, :in_c]


def sandglass_ref(x, w1, w2, gamma, beta, eps=1e-5):
    h = x @ w1
    mean = jnp.mean(h, axis=0, keepdims=True)
    var = jnp.mean((h - mean) ** 2, axis=0, keepdims=True)
    h = (h - mean) / jnp.sqrt(var + eps) * gamma + beta
    h = jnp.maximum(h, 0.0)
    out = h @ w2
    return 1.0 + jnp.tanh(out)


if __name__ == "__main__":
    B, in_c = 8, 32
    hidden = in_c * 2

    key = jax.random.PRNGKey(0)
    kx, kw1, kw2 = jax.random.split(key, 3)

    x = jax.random.normal(kx, (B, in_c), dtype=jnp.float32)
    # Deterministic param init (Kaiming-uniform-like scale), stored pre-transposed (in, out).
    w1 = jax.random.uniform(kw1, (in_c, hidden), dtype=jnp.float32,
                            minval=-1.0, maxval=1.0) / jnp.sqrt(in_c)
    w2 = jax.random.uniform(kw2, (hidden, in_c), dtype=jnp.float32,
                            minval=-1.0, maxval=1.0) / jnp.sqrt(hidden)
    gamma = jnp.ones((1, hidden), dtype=jnp.float32)   # BatchNorm weight (init = 1)
    beta = jnp.zeros((1, hidden), dtype=jnp.float32)   # BatchNorm bias (init = 0)

    out = sandglass_block(x, w1, w2, gamma, beta)
    jax.block_until_ready(out)

    ref = sandglass_ref(x, w1, w2, gamma, beta)
    assert out.shape == (B, in_c)
    # bf16 matmul operands (f32 accumulation) -> allow bf16-level tolerance vs the f32 reference.
    assert jnp.allclose(out, ref, atol=5e-2, rtol=5e-2), float(jnp.max(jnp.abs(out - ref)))

    print("KERNEL_OK")
</pallas_src>

<mosaic_0001>
module attributes {stable_mosaic.version = 11 : i64} {
  func.func @_stats_kernel(%arg0: i32, %arg1: memref<8x128xf32, #tpu.memory_space<vmem>>, %arg2: memref<128x128xbf16, #tpu.memory_space<vmem>>, %arg3: memref<1x128xf32, #tpu.memory_space<vmem>>, %arg4: memref<1x128xf32, #tpu.memory_space<vmem>>, %arg5: memref<1x128xf32, #tpu.memory_space<vmem>>, %arg6: memref<1x128xf32, #tpu.memory_space<vmem>>, %arg7: memref<1x128xf32, #tpu.memory_space<vmem>>, %arg8: memref<1x128xf32, #tpu.memory_space<vmem>>) attributes {dimension_semantics = [#tpu.dimension_semantics<arbitrary>], iteration_bounds = array<i64: 1>, scalar_prefetch = 0 : i64, scratch_operands = 2 : i64, tpu.core_type = #tpu.core_type<tc>, window_params = [{transform_indices = @transform_0, window_bounds = array<i64: 8, 128>}, {pipeline_mode = #tpu.pipeline_mode<synchronous>, transform_indices = @transform_1, window_bounds = array<i64: 128, 128>}, {pipeline_mode = #tpu.pipeline_mode<synchronous>, transform_indices = @transform_2, window_bounds = array<i64: 1, 128>}, {pipeline_mode = #tpu.pipeline_mode<synchronous>, transform_indices = @transform_3, window_bounds = array<i64: 1, 128>}, {pipeline_mode = #tpu.pipeline_mode<synchronous>, transform_indices = @transform_4, window_bounds = array<i64: 1, 128>}, {pipeline_mode = #tpu.pipeline_mode<synchronous>, transform_indices = @transform_5, window_bounds = array<i64: 1, 128>}]} {
    %c0_i32 = arith.constant 0 : i32
    %0 = arith.cmpi eq, %arg0, %c0_i32 : i32
    %1 = arith.extui %0 : i1 to i32
    %c0_i32_0 = arith.constant 0 : i32
    %2 = arith.cmpi ne, %1, %c0_i32_0 : i32
    scf.if %2 {
      %cst_16 = arith.constant 0.000000e+00 : f32
      %21 = vector.broadcast %cst_16 : f32 to vector<1x128xf32>
      %c0_17 = arith.constant 0 : index
      %c0_18 = arith.constant 0 : index
      %22 = vector.load %arg7[%c0_17, %c0_18] : memref<1x128xf32, #tpu.memory_space<vmem>>, vector<1x128xf32>
      tpu.vector_store %arg7[%c0_17, %c0_18], %21 {strides = array<i32>} : memref<1x128xf32, #tpu.memory_space<vmem>>, vector<1x128xf32>,
      %cst_19 = arith.constant 0.000000e+00 : f32
      %23 = vector.broadcast %cst_19 : f32 to vector<1x128xf32>
      %c0_20 = arith.constant 0 : index
      %c0_21 = arith.constant 0 : index
      %24 = vector.load %arg8[%c0_20, %c0_21] : memref<1x128xf32, #tpu.memory_space<vmem>>, vector<1x128xf32>
      tpu.vector_store %arg8[%c0_20, %c0_21], %23 {strides = array<i32>} : memref<1x128xf32, #tpu.memory_space<vmem>>, vector<1x128xf32>,
    } else {
    }
    %c0 = arith.constant 0 : index
    %c0_1 = arith.constant 0 : index
    %3 = vector.load %arg1[%c0, %c0_1] : memref<8x128xf32, #tpu.memory_space<vmem>>, vector<8x128xf32>
    %4 = arith.truncf %3 : vector<8x128xf32> to vector<8x128xbf16>
    %c0_2 = arith.constant 0 : index
    %c0_3 = arith.constant 0 : index
    %5 = vector.load %arg2[%c0_2, %c0_3] : memref<128x128xbf16, #tpu.memory_space<vmem>>, vector<128x128xbf16>
    %cst = arith.constant dense<0.000000e+00> : vector<8x128xf32>
    %6 = tpu.matmul %4, %5, %cst {dimension_numbers = #tpu.dot_dimension_numbers<[1], [0], [0], [1], [0, 0, 1, 1], [], []>} : vector<8x128xbf16>, vector<128x128xbf16>, vector<8x128xf32> -> vector<8x128xf32>
    %c0_4 = arith.constant 0 : index
    %c0_5 = arith.constant 0 : index
    %7 = vector.load %arg7[%c0_4, %c0_5] : memref<1x128xf32, #tpu.memory_space<vmem>>, vector<1x128xf32>
    %cst_6 = arith.constant dense<0.000000e+00> : vector<128xf32>
    %8 = vector.multi_reduction <add>, %6, %cst_6 [0] : vector<8x128xf32> to vector<128xf32>
    %9 = vector.shape_cast %8 : vector<128xf32> to vector<1x128xf32>
    %10 = arith.addf %7, %9 : vector<1x128xf32>
    %c0_7 = arith.constant 0 : index
    %c0_8 = arith.constant 0 : index
    %11 = vector.load %arg7[%c0_7, %c0_8] : memref<1x128xf32, #tpu.memory_space<vmem>>, vector<1x128xf32>
    tpu.vector_store %arg7[%c0_7, %c0_8], %10 {strides = array<i32>} : memref<1x128xf32, #tpu.memory_space<vmem>>, vector<1x128xf32>,
    %c0_9 = arith.constant 0 : index
    %c0_10 = arith.constant 0 : index
    %12 = vector.load %arg8[%c0_9, %c0_10] : memref<1x128xf32, #tpu.memory_space<vmem>>, vector<1x128xf32>
    %13 = arith.mulf %6, %6 : vector<8x128xf32>
    %cst_11 = arith.constant dense<0.000000e+00> : vector<128xf32>
    %14 = vector.multi_reduction <add>, %13, %cst_11 [0] : vector<8x128xf32> to vector<128xf32>
    %15 = vector.shape_cast %14 : vector<128xf32> to vector<1x128xf32>
    %16 = arith.addf %12, %15 : vector<1x128xf32>
    %c0_12 = arith.constant 0 : index
    %c0_13 = arith.constant 0 : index
    %17 = vector.load %arg8[%c0_12, %c0_13] : memref<1x128xf32, #tpu.memory_space<vmem>>, vector<1x128xf32>
    tpu.vector_store %arg8[%c0_12, %c0_13], %16 {strides = array<i32>} : memref<1x128xf32, #tpu.memory_space<vmem>>, vector<1x128xf32>,
    %c0_i32_14 = arith.constant 0 : i32
    %18 = arith.cmpi eq, %arg0, %c0_i32_14 : i32
    %19 = arith.extui %18 : i1 to i32
    %c0_i32_15 = arith.constant 0 : i32
    %20 = arith.cmpi ne, %19, %c0_i32_15 : i32
    scf.if %20 {
      %c0_16 = arith.constant 0 : index
      %c0_17 = arith.constant 0 : index
      %21 = vector.load %arg7[%c0_16, %c0_17] : memref<1x128xf32, #tpu.memory_space<vmem>>, vector<1x128xf32>
      %cst_18 = arith.constant 1.250000e-01 : f32
      %22 = vector.broadcast %cst_18 : f32 to vector<1x128xf32>
      %23 = arith.mulf %21, %22 : vector<1x128xf32>
      %c0_19 = arith.constant 0 : index
      %c0_20 = arith.constant 0 : index
      %24 = vector.load %arg8[%c0_19, %c0_20] : memref<1x128xf32, #tpu.memory_space<vmem>>, vector<1x128xf32>
      %cst_21 = arith.constant 1.250000e-01 : f32
      %25 = vector.broadcast %cst_21 : f32 to vector<1x128xf32>
      %26 = arith.mulf %24, %25 : vector<1x128xf32>
      %27 = arith.mulf %23, %23 : vector<1x128xf32>
      %28 = arith.subf %26, %27 : vector<1x128xf32>
      %c0_22 = arith.constant 0 : index
      %c0_23 = arith.constant 0 : index
      %29 = vector.load %arg3[%c0_22, %c0_23] : memref<1x128xf32, #tpu.memory_space<vmem>>, vector<1x128xf32>
      %cst_24 = arith.constant 9.99999974E-6 : f32
      %30 = vector.broadcast %cst_24 : f32 to vector<1x128xf32>
      %31 = arith.addf %28, %30 : vector<1x128xf32>
      %32 = math.rsqrt %31 : vector<1x128xf32>
      %33 = arith.mulf %29, %32 : vector<1x128xf32>
      %c0_25 = arith.constant 0 : index
      %c0_26 = arith.constant 0 : index
      %34 = vector.load %arg5[%c0_25, %c0_26] : memref<1x128xf32, #tpu.memory_space<vmem>>, vector<1x128xf32>
      tpu.vector_store %arg5[%c0_25, %c0_26], %33 {strides = array<i32>} : memref<1x128xf32, #tpu.memory_space<vmem>>, vector<1x128xf32>,
      %c0_27 = arith.constant 0 : index
      %c0_28 = arith.constant 0 : index
      %35 = vector.load %arg4[%c0_27, %c0_28] : memref<1x128xf32, #tpu.memory_space<vmem>>, vector<1x128xf32>
      %36 = arith.mulf %23, %33 : vector<1x128xf32>
      %37 = arith.subf %35, %36 : vector<1x128xf32>
      %c0_29 = arith.constant 0 : index
      %c0_30 = arith.constant 0 : index
      %38 = vector.load %arg6[%c0_29, %c0_30] : memref<1x128xf32, #tpu.memory_space<vmem>>, vector<1x128xf32>
      tpu.vector_store %arg6[%c0_29, %c0_30], %37 {strides = array<i32>} : memref<1x128xf32, #tpu.memory_space<vmem>>, vector<1x128xf32>,
    } else {
    }
    return
  }
  func.func @transform_0(%arg0: i32) -> (i32, i32) {
    %c0_i32 = arith.constant 0 : i32
    %c0_i32_0 = arith.constant 0 : i32
    return %arg0, %c0_i32 : i32, i32
  }
  func.func @transform_1(%arg0: i32) -> (i32, i32) {
    %c0_i32 = arith.constant 0 : i32
    %c0_i32_0 = arith.constant 0 : i32
    %c0_i32_1 = arith.constant 0 : i32
    return %c0_i32, %c0_i32_0 : i32, i32
  }
  func.func @transform_2(%arg0: i32) -> (i32, i32) {
    %c0_i32 = arith.constant 0 : i32
    %c0_i32_0 = arith.constant 0 : i32
    %c0_i32_1 = arith.constant 0 : i32
    return %c0_i32, %c0_i32_0 : i32, i32
  }
  func.func @transform_3(%arg0: i32) -> (i32, i32) {
    %c0_i32 = arith.constant 0 : i32
    %c0_i32_0 = arith.constant 0 : i32
    %c0_i32_1 = arith.constant 0 : i32
    return %c0_i32, %c0_i32_0 : i32, i32
  }
  func.func @transform_4(%arg0: i32) -> (i32, i32) {
    %c0_i32 = arith.constant 0 : i32
    %c0_i32_0 = arith.constant 0 : i32
    %c0_i32_1 = arith.constant 0 : i32
    return %c0_i32, %c0_i32_0 : i32, i32
  }
  func.func @transform_5(%arg0: i32) -> (i32, i32) {
    %c0_i32 = arith.constant 0 : i32
    %c0_i32_0 = arith.constant 0 : i32
    %c0_i32_1 = arith.constant 0 : i32
    return %c0_i32, %c0_i32_0 : i32, i32
  }
}

</mosaic_0001>

<bundles_post_ra>
// kernel: tpu_custom_call.1
= control target key start
LH: loop header
LB: loop body
LE: loop exit
PB: predicated region body
PF: predicated region fallthrough
CT: control target
= control target key end

     0   :  { %11 = vsyncpa [#allocation5], 0  ;;  %s426_s0 = inlined_call_operand.hbm [shape: f32[8,128], index: 0, kind: input, shape index: {}]   ;;  %s427_s1 = inlined_call_operand.hbm [shape: bf16[128,128], index: 1, kind: input, shape index: {}]   ;;  %s428_s2 = inlined_call_operand.vmem [shape: f32[1,128], index: 2, kind: input, shape index: {}]   ;;  %s429_s3 = inlined_call_operand.vmem [shape: f32[1,128], index: 3, kind: input, shape index: {}]   ;;  %s430_s4 = inlined_call_operand.hbm [shape: f32[1,128], index: 4, kind: output, shape index: {0}]   ;;  %s431_s5 = inlined_call_operand.hbm [shape: f32[1,128], index: 5, kind: output, shape index: {1}]  }
   0x1   :  { %12 = vsyncpa [#allocation8], 0 }
   0x2   :  { %13 = vsyncpa [#allocation6], 0 }
   0x3   :  { %14 = vsyncpa [#allocation11], 0  ;;  %s370_s18 = smov [#allocation4]   ;;  %s371_s20 = smov [#allocation7]  }
   0x4   :  { %s21_s19 = sshll.u32 %s370_s18, 4  ;;  %s30_s21 = sshll.u32 %s371_s20, 4  ;;  %s22_s19 = int_to_ptr.vmem [resolvable:$true] %s21_s19  ;;  %s31_s21 = int_to_ptr.vmem [resolvable:$true] %s30_s21 }
   0x5   :  { %s290_s22 = scalar_lea.vmem %s22_s19, 128  ;;  %p295_p1 = scmp.lt.s32.totalorder %s22_s19, %s22_s19 }
   0x6   :  { %p291_p0 = scmp.ne.s32.totalorder %s22_s19, %s290_s22  ;;  %p296_p2 = scmp.lt.s32.totalorder %s290_s22, %s290_s22 }
   0x8   :  { %p297_p3 = por %p296_p2, %p295_p1 }
   0xa   :  { %p298_p4 = pnand %p297_p3, %p291_p0 }
   0xc   :  { %301 = shalt.err (!%p298_p4)
}
   0xd   :  { %24 = dma.hbm_to_vmem [thread:$0]  %s426_s0, 128, %s22_s19, [#allocation5]  }
   0xe   :  { %s310_s25 = scalar_lea.vmem %s31_s21, 1024  ;;  %p315_p6 = scmp.lt.s32.totalorder %s31_s21, %s31_s21 }
   0xf   :  { %p311_p5 = scmp.ne.s32.totalorder %s31_s21, %s310_s25  ;;  %p316_p7 = scmp.lt.s32.totalorder %s310_s25, %s310_s25 }
  0x11   :  { %p317_p8 = por %p316_p7, %p315_p6 }
  0x13   :  { %p318_p9 = pnand %p317_p8, %p311_p5 }
  0x15   :  { %321 = shalt.err (!%p318_p9)
}
  0x16   :  { %s372_s26 = smov 64   ;;  %s373_s27 = smov 4  }
  0x17   :  { %36 = dma.hbm_to_vmem [thread:$0]  %s427_s1, 1024, %s31_s21, [#allocation8], %s372_s26, %s372_s26, %s373_s27  }
  0x18   :  { %362 = dma.done.wait [#allocation5], 128  }
  0x19   :  { %363 = vsyncadd [#allocation5], 4294967168 }
  0x1a   :  { %364 = dma.done.wait [#allocation8], 1024  }
  0x1b   :  { %365 = vsyncadd [#allocation8], 4294966272  ;;  %v374_v0 = vmov 0.0   ;;  %vm375_vm0 = vmmov 0   ;;  %v272_v1 = vld [vmem:[#allocation7 + $0x38] sm:$0xff]   ;;  %v273_v2 = vld [vmem:[#allocation7 + $0x30] sm:$0xff]  }
  0x1c   :  { %244 = vmatprep.subr.bf16.mxu0 %v374_v0  ;;  %52 = vst [vmem:[#allocation2] sm:$0x1] %v374_v0  ;;  %53 = vst [vmem:[#allocation3] sm:$0x1] %v374_v0  ;;  %260 = vmatprep.mubr.msk.bf16.mxu0 %vm375_vm0, %v374_v0  ;;  %v274_v3 = vld [vmem:[#allocation7 + $0x28] sm:$0xff]   ;;  %v275_v4 = vld [vmem:[#allocation7 + $0x20] sm:$0xff]  }
  0x1d   :  { %245 = vmatpush3.bf16.msra.mxu0 %v272_v1  ;;  %v276_v5 = vld [vmem:[#allocation7 + $0x18] sm:$0xff]   ;;  %v277_v6 = vld [vmem:[#allocation7 + $0x10] sm:$0xff]   ;;  %v278_v7 = vld [vmem:[#allocation7 + $0x8] sm:$0xff]   ;;  %s376_s30 = smov [#allocation9]   ;;  %s377_s9 = smov [#allocation10]  }
  0x1e   :  { %246 = vmatprep.subr.bf16.mxu0 %v374_v0  ;;  %v279_v8 = vld [vmem:[#allocation7] sm:$0xff]   ;;  %v54_v9 = vld [vmem:[#allocation4] sm:$0xff]  ;;  %v188_v39 = vld [vmem:[%s428_s2] sm:$0x1]  ;;  %s203_s6 = sshll.u32 %s376_s30, 4  ;;  %s213_s10 = sshll.u32 %s377_s9, 4  ;;  %s204_s6 = int_to_ptr.vmem [resolvable:$true] %s203_s6  ;;  %s214_s10 = int_to_ptr.vmem [resolvable:$true] %s213_s10 }
  0x1f   :  { %v55_v10 = vpack.c.bf16 %v54_v9, %v54_v9  ;;  %v193_v42 = vld [vmem:[%s429_s3] sm:$0x1]  ;;  %s322_s11 = scalar_lea.vmem %s204_s6, 16  ;;  %s326_s12 = scalar_lea.vmem %s204_s6, 32 }
  0x20   :  { %p323_p10 = scmp.ne.s32.totalorder %s204_s6, %s322_s11  ;;  %p327_p11 = scmp.lt.s32.totalorder %s204_s6, %s204_s6 }
  0x21   :  { %247 = vmatpush3.bf16.msra.mxu0 %v273_v2  ;;  %p328_p12 = scmp.lt.s32.totalorder %s326_s12, %s322_s11 }
  0x22   :  { %248 = vmatprep.subr.bf16.mxu0 %v374_v0 }
  0x23   :  { %v160_v25 = vld [vmem:[#allocation2] sm:$0x1]  ;;  %v169_v28 = vld [vmem:[#allocation3] sm:$0x1]  ;;  %p329_p13 = por %p328_p12, %p327_p11 }
  0x25   :  { %249 = vmatpush3.bf16.msra.mxu0 %v274_v3  ;;  %p330_p0 = pnand %p329_p13, %p323_p10 }
  0x26   :  { %250 = vmatprep.subr.bf16.mxu0 %v374_v0 }
  0x29   :  { %251 = vmatpush3.bf16.msra.mxu0 %v275_v4 }
  0x2a   :  { %252 = vmatprep.subr.bf16.mxu0 %v374_v0 }
  0x2d   :  { %253 = vmatpush3.bf16.msra.mxu0 %v276_v5 }
  0x2e   :  { %254 = vmatprep.subr.bf16.mxu0 %v374_v0 }
  0x31   :  { %255 = vmatpush3.bf16.msra.mxu0 %v277_v6 }
  0x32   :  { %256 = vmatprep.subr.bf16.mxu0 %v374_v0 }
  0x35   :  { %257 = vmatpush3.bf16.msra.mxu0 %v278_v7 }
  0x36   :  { %258 = vmatprep.subr.bf16.mxu0 %v374_v0 }
  0x39   :  { %259 = vmatpush3.bf16.msra.mxu0 %v279_v8 }
  0x3c   :  { %261 = vmatmul.mubr.bf16.vlgmr.msra.gmra.mxu0 %v55_v10 }
  0xfc   :  { %v154_v11 = vpop.f32.mrf.mxu0 }
  0xfd   :  { %v161_v12 = vrot.slane %v154_v11, 4  ;;  %v170_v13 = vmul.f32 %v154_v11, %v154_v11 }
  0xfe   :  { %v262_v14 = vpop.f32.mrf.mxu0 }
  0xff   :  { %v162_v15 = vadd.f32 %v161_v12, %v154_v11  ;;  %v171_v16 = vrot.slane %v170_v13, 4 }
 0x100   :  { %v157_v17 = vpop.f32.mrf.mxu0 }
 0x101   :  { %v163_v18 = vrot.slane %v162_v15, 2  ;;  %v172_v19 = vadd.f32 %v171_v16, %v170_v13 }
 0x102   :  { %v263_v20 = vpop.f32.mrf.mxu0 }
 0x103   :  { %v164_v21 = vadd.f32 %v163_v18, %v162_v15  ;;  %v173_v22 = vrot.slane %v172_v19, 2 }
 0x105   :  { %v165_v23 = vrot.slane %v164_v21, 1  ;;  %v174_v24 = vadd.f32 %v173_v22, %v172_v19 }
 0x107   :  { %v166_v26 = vadd.f32 %v165_v23, %v164_v21  ;;  %v175_v27 = vrot.slane %v174_v24, 1 }
 0x109   :  { %v167_v29 = vadd.f32 %v166_v26, %v160_v25  ;;  %v176_v30 = vadd.f32 %v175_v27, %v174_v24 }
 0x10b   :  { %168 = vst [vmem:[#allocation2] sm:$0x1] %v167_v29  ;;  %v177_v31 = vadd.f32 %v176_v30, %v169_v28 }
 0x10d   :  { %178 = vst [vmem:[#allocation3] sm:$0x1] %v177_v31 }
 0x112   :  { %v182_v32 = vld [vmem:[#allocation2] sm:$0x1] }
 0x113   :  { %v183_v33 = vmul.f32 0.125, %v182_v32 }
 0x114   :  { %v184_v34 = vld [vmem:[#allocation3] sm:$0x1] }
 0x115   :  { %v185_v35 = vmul.f32 0.125, %v184_v34  ;;  %v186_v36 = vmul.f32 %v183_v33, %v183_v33 }
 0x117   :  { %v187_v37 = vsub.f32 %v185_v35, %v186_v36 }
 0x119   :  { %v189_v38 = vadd.f32 1e-05, %v187_v37 }
 0x11b   :  { %280 = vrsqrt.f32 %v189_v38 }
 0x128   :  { %v281_v40 = vpop.eup %280 }
 0x129   :  { %v191_v41 = vmul.f32 %v281_v40, %v188_v39 }
 0x12b   :  { %192 = vst [vmem:[#allocation9] sm:$0x1] %v191_v41  ;;  %v194_v43 = vmul.f32 %v191_v41, %v183_v33 }
 0x12c   :  { %333 = shalt.err (!%p330_p0)
}
 0x12d   :  { %206 = dma.vmem_to_hbm [thread:$0]  %s204_s6, 16, %s430_s4, [#allocation6]   ;;  %v195_v44 = vsub.f32 %v193_v42, %v194_v43 }
 0x12e   :  { %s342_s3 = scalar_lea.vmem %s214_s10, 16  ;;  %s346_s14 = scalar_lea.vmem %s214_s10, 32 }
 0x12f   :  { %196 = vst [vmem:[#allocation10] sm:$0x1] %v195_v44  ;;  %p343_p1 = scmp.ne.s32.totalorder %s214_s10, %s342_s3  ;;  %p347_p2 = scmp.lt.s32.totalorder %s214_s10, %s214_s10 }
 0x130   :  { %p348_p3 = scmp.lt.s32.totalorder %s346_s14, %s342_s3 }
 0x132   :  { %p349_p4 = por %p348_p3, %p347_p2 }
 0x134   :  { %p350_p5 = pnand %p349_p4, %p343_p1 }
 0x136   :  { %353 = shalt.err (!%p350_p5)
}
 0x137   :  { %216 = dma.vmem_to_hbm [thread:$0]  %s214_s10, 16, %s431_s5, [#allocation11]  }
 0x138   :  { %366 = dma.done.wait [#allocation6], 16  }
 0x139   :  { %367 = vsyncadd [#allocation6], 4294967280 }
 0x13a   :  { %368 = dma.done.wait [#allocation11], 16  }
 0x13b   :  { %369 = vsyncadd [#allocation11], 4294967280 }
 0x13c   :  { %223 = vsyncpa [#allocation5], 1 }
 0x13d   :  { %224 = vsyncpa [#allocation8], 1 }
 0x13e   :  { %225 = vsyncpa [#allocation6], 1 }
 0x13f   :  { %226 = vsyncpa [#allocation11], 1 }

</bundles_post_ra>
